<compile_context>
chip_gen: v7x
topology: tpu7x:2x2x1
jax: 0.10.0
libtpu: 0.0.40
codegen_flags: <defaults>
</compile_context>

<pallas_src>
import functools

import jax
import jax.numpy as jnp
from jax.experimental import pallas as pl
from jax.experimental.pallas import tpu as pltpu


# ----------------------------------------------------------------------------
# Pallas kernel: MRC head, tiled over (batch, i-tile, j-tile)
#   se_logits[b, i, :]  = x[b,i] @ [Ws|We] + [bs|be]             (TI, 4)
#   span[b, i, j]       = sigmoid( gelu(x[b,i]@W1a + x[b,j]@W1b + b1) @ W2 + b2 )
# The (2H -> H) linear on concat(x_i, x_j) is split into the two H-halves so
# the (TI, TJ, 2H) tensor is never materialized.
# ----------------------------------------------------------------------------
def mrc_head_kernel(seq_i_ref, seq_j_ref, wse_ref, bse_ref,
                    w1a_ref, w1b_ref, b1_ref, w2_ref, b2_ref,
                    se_ref, span_ref, a_scratch, *, gelu_dtype):
    j = pl.program_id(2)

    # Work depending only on (batch, i-tile): fused start|end classifier and
    # the "start half" projection a = x_i @ W1a + b1, cached in scratch across
    # the innermost j axis.
    @pl.when(j == 0)
    def _():
        x_i = seq_i_ref[0].astype(jnp.bfloat16)                           # (TI, H)
        se_ref[0] = (jnp.dot(x_i, wse_ref[...].astype(jnp.bfloat16),
                             preferred_element_type=jnp.float32)
                     + bse_ref[...])                                       # (TI, 4)
        a_scratch[...] = (jnp.dot(x_i, w1a_ref[...].astype(jnp.bfloat16),
                                  preferred_element_type=jnp.float32)
                          + b1_ref[...])                                   # (TI, H)

    # "end half" projection for this j-tile: a tiny (TJ,H)x(H,H) MXU matmul,
    # recomputed per (i, j) — negligible vs. the TI*TJ*H gelu work.
    x_j = seq_j_ref[0].astype(jnp.bfloat16)                                # (TJ, H)
    c = jnp.dot(x_j, w1b_ref[...].astype(jnp.bfloat16),
                preferred_element_type=jnp.float32)                        # (TJ, H)

    ti, hid = a_scratch.shape
    tj = c.shape[0]

    a = a_scratch[...].astype(gelu_dtype)                                  # (TI, H)
    h = jax.nn.gelu(a[:, None, :] + c[None, :, :].astype(gelu_dtype))      # (TI,TJ,H)
    # TODO(synk): jax.nn.gelu uses the tanh approximation; PyTorch nn.GELU in
    #             MultiNonLinearClassifier uses exact erf GELU (~1e-3 logits diff).

    # H-reduction on the MXU (instead of VPU-mul + XLU cross-lane reduce),
    # accumulated in f32; sigmoid in f32.
    span = jnp.dot(h.reshape(ti * tj, hid), w2_ref[...].astype(gelu_dtype),
                   preferred_element_type=jnp.float32).reshape(ti, tj)
    span = span + b2_ref[...]                                              # (TI, TJ)
    span_ref[0] = jax.nn.sigmoid(span)


def _span_gelu_dtype():
    # bf16 VPU/EUP on v6e/v7x: ~2x gelu throughput and half the (TI,TJ,H) VMEM
    # footprint.  v5e and earlier have f32-only VPU/EUP -> keep f32 there.
    try:
        kind = jax.devices()[0].device_kind.lower()
    except Exception:
        return jnp.float32
    if any(v in kind for v in ("v2", "v3", "v4", "v5")):
        return jnp.float32
    return jnp.bfloat16


def _pick_tile(s, target=128):
    """Largest multiple-of-8 divisor of s that is <= target (or s if s <= target)."""
    if s <= target:
        return s
    best = 0
    for t in range(8, target + 1, 8):
        if s % t == 0:
            best = t
    return best if best > 0 else s


def mrc_head(seq, ws, bs, we, be, w1a, w1b, b1, w2, b2):
    B, S, H = seq.shape
    TI = _pick_tile(S)       # i-tile
    TJ = _pick_tile(S)       # j-tile (multiple of 128 when possible -> lane-dense store)
    n_i, n_j = S // TI, S // TJ

    # Fuse the start/end Linear(H, 2) classifiers into one (H, 4) matmul.
    wse = jnp.concatenate([ws, we], axis=1)     # (H, 4)
    bse = jnp.concatenate([bs, be], axis=1)     # (1, 4)

    gelu_dtype = _span_gelu_dtype()

    def full_spec(a):
        nd = a.ndim
        return pl.BlockSpec(a.shape, lambda b, i, j, nd=nd: (0,) * nd)

    # Advisory cost estimate (matmuls + broadcast-add; gelu tanh + sigmoid).
    flops = int(2 * B * (S * H * 4 + S * H * H + n_i * S * H * H + S * S * H)
                + B * S * S * H)
    transcendentals = int(B * S * S * (H + 1))
    bytes_accessed = int(4 * B * S * H * (1 + n_j)            # seq_i + seq_j tiles
                         + 4 * (2 * H * H + 6 * H + 5)        # weights / biases
                         + 4 * B * S * 4 + 4 * B * S * S)     # outputs

    out_shapes = (
        jax.ShapeDtypeStruct((B, S, 4), jnp.float32),   # fused [start|end] logits
        jax.ShapeDtypeStruct((B, S, S), jnp.float32),   # span sigmoid probs
    )

    kernel = functools.partial(mrc_head_kernel, gelu_dtype=gelu_dtype)
    se_logits, span_probs = pl.pallas_call(
        kernel,
        out_shape=out_shapes,
        grid=(B, n_i, n_j),
        in_specs=[
            pl.BlockSpec((1, TI, H), lambda b, i, j: (b, i, 0)),   # x rows (start side)
            pl.BlockSpec((1, TJ, H), lambda b, i, j: (b, j, 0)),   # x rows (end side)
            full_spec(wse), full_spec(bse),
            full_spec(w1a), full_spec(w1b), full_spec(b1),
            full_spec(w2), full_spec(b2),
        ],
        out_specs=(
            pl.BlockSpec((1, TI, 4), lambda b, i, j: (b, i, 0)),   # resident across j
            pl.BlockSpec((1, TI, TJ), lambda b, i, j: (b, i, j)),
        ),
        scratch_shapes=[pltpu.VMEM((TI, H), jnp.float32)],         # cached a-tile
        compiler_params=pltpu.CompilerParams(
            dimension_semantics=("parallel", "parallel", "arbitrary"),
            vmem_limit_bytes=64 * 1024 * 1024),
        cost_estimate=pl.CostEstimate(flops=flops,
                                      transcendentals=transcendentals,
                                      bytes_accessed=bytes_accessed),
    )(seq, seq, wse, bse, w1a, w1b, b1, w2, b2)

    return se_logits[..., :2], se_logits[..., 2:], span_probs


# ----------------------------------------------------------------------------
# Minimal synthetic BERT encoder (plain-JAX glue producing sequence_output)
# ----------------------------------------------------------------------------
def layer_norm(x, g, b, eps=1e-12):
    mu = jnp.mean(x, axis=-1, keepdims=True)
    var = jnp.mean((x - mu) ** 2, axis=-1, keepdims=True)
    return (x - mu) / jnp.sqrt(var + eps) * g + b


def bert_encode(p, input_ids, token_type_ids, attention_mask):
    B, S = input_ids.shape
    x = (p["word_emb"][input_ids]
         + p["pos_emb"][None, :S, :]
         + p["type_emb"][token_type_ids])
    x = layer_norm(x, p["emb_ln_g"], p["emb_ln_b"])
    H = x.shape[-1]
    nh = p["num_heads"]
    dh = H // nh
    mask_bias = (1.0 - attention_mask.astype(jnp.float32))[:, None, None, :] * -10000.0

    q = x @ p["wq"] + p["bq"]
    k = x @ p["wk"] + p["bk"]
    v = x @ p["wv"] + p["bv"]

    def split_heads(t):
        return t.reshape(B, S, nh, dh).transpose(0, 2, 1, 3)

    qh, kh, vh = split_heads(q), split_heads(k), split_heads(v)
    scores = jnp.einsum("bhqd,bhkd->bhqk", qh, kh) / jnp.sqrt(jnp.float32(dh))
    scores = scores + mask_bias
    probs = jax.nn.softmax(scores, axis=-1)
    ctx = jnp.einsum("bhqk,bhkd->bhqd", probs, vh).transpose(0, 2, 1, 3).reshape(B, S, H)
    x = layer_norm(x + ctx @ p["wo"] + p["bo"], p["attn_ln_g"], p["attn_ln_b"])
    ffn = jax.nn.gelu(x @ p["wi"] + p["bi"]) @ p["wf"] + p["bf"]
    x = layer_norm(x + ffn, p["ffn_ln_g"], p["ffn_ln_b"])
    pooled = jnp.tanh(x[:, 0, :] @ p["wp"] + p["bp"])
    return x, pooled


# ----------------------------------------------------------------------------
# Full forward (inference branch of BertQueryNER.forward)
# ----------------------------------------------------------------------------
def bert_query_ner_forward(params, input_ids, token_type_ids=None, attention_mask=None):
    if token_type_ids is None:
        token_type_ids = jnp.zeros_like(input_ids)
    if attention_mask is None:
        attention_mask = jnp.ones_like(input_ids)
    seq, _pooled = bert_encode(params["bert"], input_ids, token_type_ids, attention_mask)
    h = params["head"]
    start_logits, end_logits, span_probs = mrc_head(
        seq, h["ws"], h["bs"], h["we"], h["be"],
        h["w1a"], h["w1b"], h["b1"], h["w2"], h["b2"])
    # inference branch: argmax over the 2 start/end classes; sigmoid span done in-kernel
    start_pred = jnp.argmax(start_logits, axis=-1)
    end_pred = jnp.argmax(end_logits, axis=-1)
    return start_pred, end_pred, span_probs


# ----------------------------------------------------------------------------
# Deterministic parameter init (synthetic; no checkpoint load)
# ----------------------------------------------------------------------------
def _dense(key, fan_in, fan_out):
    return jax.random.normal(key, (fan_in, fan_out), jnp.float32) * 0.02


def init_params(key, vocab, max_pos, H, NH, I):
    ks = iter(jax.random.split(key, 16))
    bert = dict(
        num_heads=NH,
        word_emb=jax.random.normal(next(ks), (vocab, H), jnp.float32) * 0.02,
        pos_emb=jax.random.normal(next(ks), (max_pos, H), jnp.float32) * 0.02,
        type_emb=jax.random.normal(next(ks), (2, H), jnp.float32) * 0.02,
        emb_ln_g=jnp.ones((H,), jnp.float32), emb_ln_b=jnp.zeros((H,), jnp.float32),
        wq=_dense(next(ks), H, H), bq=jnp.zeros((H,), jnp.float32),
        wk=_dense(next(ks), H, H), bk=jnp.zeros((H,), jnp.float32),
        wv=_dense(next(ks), H, H), bv=jnp.zeros((H,), jnp.float32),
        wo=_dense(next(ks), H, H), bo=jnp.zeros((H,), jnp.float32),
        attn_ln_g=jnp.ones((H,), jnp.float32), attn_ln_b=jnp.zeros((H,), jnp.float32),
        wi=_dense(next(ks), H, I), bi=jnp.zeros((I,), jnp.float32),
        wf=_dense(next(ks), I, H), bf=jnp.zeros((H,), jnp.float32),
        ffn_ln_g=jnp.ones((H,), jnp.float32), ffn_ln_b=jnp.zeros((H,), jnp.float32),
        wp=_dense(next(ks), H, H), bp=jnp.zeros((H,), jnp.float32),
    )
    head = dict(
        # start/end Linear(H, 2)
        ws=_dense(next(ks), H, 2), bs=jnp.zeros((1, 2), jnp.float32),
        we=_dense(next(ks), H, 2), be=jnp.zeros((1, 2), jnp.float32),
        # span MLP: Linear(2H, H) split into the two H-halves of the concat input
        w1a=_dense(next(ks), H, H), w1b=_dense(next(ks), H, H),
        b1=jnp.zeros((1, H), jnp.float32),
        # Linear(H, 1) stored column-major as (H, 1) for the MXU contraction
        w2=_dense(next(ks), H, 1), b2=jnp.zeros((1, 1), jnp.float32),
    )
    return dict(bert=bert, head=head)


if __name__ == "__main__":
    B, S, H, NH, I, V = 2, 8, 32, 2, 64, 64
    key = jax.random.PRNGKey(0)
    k_params, k_ids = jax.random.split(key)
    params = init_params(k_params, vocab=V, max_pos=16, H=H, NH=NH, I=I)

    input_ids = jax.random.randint(k_ids, (B, S), 0, V, dtype=jnp.int32)
    token_type_ids = jnp.zeros((B, S), jnp.int32)
    attention_mask = jnp.ones((B, S), jnp.int32)

    start_pred, end_pred, span_probs = bert_query_ner_forward(
        params, input_ids, token_type_ids, attention_mask)
    jax.block_until_ready((start_pred, end_pred, span_probs))

    assert start_pred.shape == (B, S)
    assert end_pred.shape == (B, S)
    assert span_probs.shape == (B, S, S)
    assert bool(jnp.all(jnp.isfinite(span_probs)))
    assert bool(jnp.all((span_probs >= 0.0) & (span_probs <= 1.0)))
    print("KERNEL_OK")
</pallas_src>

<mosaic_0001>
module attributes {stable_mosaic.version = 11 : i64} {
  func.func @mrc_head_kernel(%arg0: i32, %arg1: i32, %arg2: i32, %arg3: memref<1x8x32xf32, #tpu.memory_space<vmem>>, %arg4: memref<1x8x32xf32, #tpu.memory_space<vmem>>, %arg5: memref<32x4xf32, #tpu.memory_space<vmem>>, %arg6: memref<1x4xf32, #tpu.memory_space<vmem>>, %arg7: memref<32x32xf32, #tpu.memory_space<vmem>>, %arg8: memref<32x32xf32, #tpu.memory_space<vmem>>, %arg9: memref<1x32xf32, #tpu.memory_space<vmem>>, %arg10: memref<32x1xf32, #tpu.memory_space<vmem>>, %arg11: memref<1x1xf32, #tpu.memory_space<vmem>>, %arg12: memref<1x8x4xf32, #tpu.memory_space<vmem>>, %arg13: memref<1x8x8xf32, #tpu.memory_space<vmem>>, %arg14: memref<8x32xf32, #tpu.memory_space<vmem>>) attributes {dimension_semantics = [#tpu.dimension_semantics<parallel>, #tpu.dimension_semantics<parallel>, #tpu.dimension_semantics<arbitrary>], iteration_bounds = array<i64: 2, 1, 1>, scalar_prefetch = 0 : i64, scratch_operands = 1 : i64, tpu.core_type = #tpu.core_type<tc>, window_params = [{transform_indices = @transform_0, window_bounds = array<i64: 1, 8, 32>}, {transform_indices = @transform_1, window_bounds = array<i64: 1, 8, 32>}, {pipeline_mode = #tpu.pipeline_mode<synchronous>, transform_indices = @transform_2, window_bounds = array<i64: 32, 4>}, {pipeline_mode = #tpu.pipeline_mode<synchronous>, transform_indices = @transform_3, window_bounds = array<i64: 1, 4>}, {pipeline_mode = #tpu.pipeline_mode<synchronous>, transform_indices = @transform_4, window_bounds = array<i64: 32, 32>}, {pipeline_mode = #tpu.pipeline_mode<synchronous>, transform_indices = @transform_5, window_bounds = array<i64: 32, 32>}, {pipeline_mode = #tpu.pipeline_mode<synchronous>, transform_indices = @transform_6, window_bounds = array<i64: 1, 32>}, {pipeline_mode = #tpu.pipeline_mode<synchronous>, transform_indices = @transform_7, window_bounds = array<i64: 32, 1>}, {pipeline_mode = #tpu.pipeline_mode<synchronous>, transform_indices = @transform_8, window_bounds = array<i64: 1, 1>}, {transform_indices = @transform_9, window_bounds = array<i64: 1, 8, 4>}, {transform_indices = @transform_10, window_bounds = array<i64: 1, 8, 8>}]} {
    %c0_i32 = arith.constant 0 : i32
    %0 = arith.cmpi eq, %arg2, %c0_i32 : i32
    %1 = arith.extui %0 : i1 to i32
    %c0_i32_0 = arith.constant 0 : i32
    %2 = arith.cmpi ne, %1, %c0_i32_0 : i32
    scf.if %2 {
      %c0_20 = arith.constant 0 : index
      %c0_21 = arith.constant 0 : index
      %c0_22 = arith.constant 0 : index
      %46 = vector.load %arg3[%c0_20, %c0_21, %c0_22] : memref<1x8x32xf32, #tpu.memory_space<vmem>>, vector<1x8x32xf32>
      %47 = vector.shape_cast %46 : vector<1x8x32xf32> to vector<8x32xf32>
      %48 = arith.truncf %47 : vector<8x32xf32> to vector<8x32xbf16>
      %c0_23 = arith.constant 0 : index
      %c0_24 = arith.constant 0 : index
      %49 = vector.load %arg5[%c0_23, %c0_24] : memref<32x4xf32, #tpu.memory_space<vmem>>, vector<32x4xf32>
      %50 = arith.truncf %49 : vector<32x4xf32> to vector<32x4xbf16>
      %cst_25 = arith.constant dense<0.000000e+00> : vector<8x4xf32>
      %51 = tpu.matmul %48, %50, %cst_25 {dimension_numbers = #tpu.dot_dimension_numbers<[1], [0], [0], [1], [0, 0, 1, 1], [], []>} : vector<8x32xbf16>, vector<32x4xbf16>, vector<8x4xf32> -> vector<8x4xf32>
      %c0_26 = arith.constant 0 : index
      %c0_27 = arith.constant 0 : index
      %52 = vector.load %arg6[%c0_26, %c0_27] : memref<1x4xf32, #tpu.memory_space<vmem>>, vector<1x4xf32>
      %53 = vector.broadcast %52 : vector<1x4xf32> to vector<8x4xf32>
      %54 = arith.addf %51, %53 : vector<8x4xf32>
      %c0_28 = arith.constant 0 : index
      %c0_29 = arith.constant 0 : index
      %c0_30 = arith.constant 0 : index
      %55 = vector.load %arg12[%c0_28, %c0_29, %c0_30] : memref<1x8x4xf32, #tpu.memory_space<vmem>>, vector<1x8x4xf32>
      %56 = vector.shape_cast %55 : vector<1x8x4xf32> to vector<8x4xf32>
      %57 = vector.shape_cast %54 : vector<8x4xf32> to vector<1x8x4xf32>
      tpu.vector_store %arg12[%c0_28, %c0_29, %c0_30], %57 {strides = array<i32>} : memref<1x8x4xf32, #tpu.memory_space<vmem>>, vector<1x8x4xf32>,
      %c0_31 = arith.constant 0 : index
      %c0_32 = arith.constant 0 : index
      %58 = vector.load %arg7[%c0_31, %c0_32] : memref<32x32xf32, #tpu.memory_space<vmem>>, vector<32x32xf32>
      %59 = arith.truncf %58 : vector<32x32xf32> to vector<32x32xbf16>
      %cst_33 = arith.constant dense<0.000000e+00> : vector<8x32xf32>
      %60 = tpu.matmul %48, %59, %cst_33 {dimension_numbers = #tpu.dot_dimension_numbers<[1], [0], [0], [1], [0, 0, 1, 1], [], []>} : vector<8x32xbf16>, vector<32x32xbf16>, vector<8x32xf32> -> vector<8x32xf32>
      %c0_34 = arith.constant 0 : index
      %c0_35 = arith.constant 0 : index
      %61 = vector.load %arg9[%c0_34, %c0_35] : memref<1x32xf32, #tpu.memory_space<vmem>>, vector<1x32xf32>
      %62 = vector.broadcast %61 : vector<1x32xf32> to vector<8x32xf32>
      %63 = arith.addf %60, %62 : vector<8x32xf32>
      %c0_36 = arith.constant 0 : index
      %c0_37 = arith.constant 0 : index
      %64 = vector.load %arg14[%c0_36, %c0_37] : memref<8x32xf32, #tpu.memory_space<vmem>>, vector<8x32xf32>
      tpu.vector_store %arg14[%c0_36, %c0_37], %63 {strides = array<i32>} : memref<8x32xf32, #tpu.memory_space<vmem>>, vector<8x32xf32>,
    } else {
    }
    %c0 = arith.constant 0 : index
    %c0_1 = arith.constant 0 : index
    %c0_2 = arith.constant 0 : index
    %3 = vector.load %arg4[%c0, %c0_1, %c0_2] : memref<1x8x32xf32, #tpu.memory_space<vmem>>, vector<1x8x32xf32>
    %4 = vector.shape_cast %3 : vector<1x8x32xf32> to vector<8x32xf32>
    %5 = arith.truncf %4 : vector<8x32xf32> to vector<8x32xbf16>
    %c0_3 = arith.constant 0 : index
    %c0_4 = arith.constant 0 : index
    %6 = vector.load %arg8[%c0_3, %c0_4] : memref<32x32xf32, #tpu.memory_space<vmem>>, vector<32x32xf32>
    %7 = arith.truncf %6 : vector<32x32xf32> to vector<32x32xbf16>
    %cst = arith.constant dense<0.000000e+00> : vector<8x32xf32>
    %8 = tpu.matmul %5, %7, %cst {dimension_numbers = #tpu.dot_dimension_numbers<[1], [0], [0], [1], [0, 0, 1, 1], [], []>} : vector<8x32xbf16>, vector<32x32xbf16>, vector<8x32xf32> -> vector<8x32xf32>
    %c0_5 = arith.constant 0 : index
    %c0_6 = arith.constant 0 : index
    %9 = vector.load %arg14[%c0_5, %c0_6] : memref<8x32xf32, #tpu.memory_space<vmem>>, vector<8x32xf32>
    %10 = arith.truncf %9 : vector<8x32xf32> to vector<8x32xbf16>
    %11 = vector.shape_cast %10 : vector<8x32xbf16> to vector<8x1x32xbf16>
    %12 = vector.shape_cast %8 : vector<8x32xf32> to vector<1x8x32xf32>
    %13 = arith.truncf %12 : vector<1x8x32xf32> to vector<1x8x32xbf16>
    %14 = vector.broadcast %11 : vector<8x1x32xbf16> to vector<8x8x32xbf16>
    %15 = vector.broadcast %13 : vector<1x8x32xbf16> to vector<8x8x32xbf16>
    %16 = arith.addf %14, %15 : vector<8x8x32xbf16>
    %17 = arith.mulf %16, %16 : vector<8x8x32xbf16>
    %18 = arith.mulf %16, %17 : vector<8x8x32xbf16>
    %cst_7 = arith.constant 4.467770e-02 : bf16
    %19 = vector.broadcast %cst_7 : bf16 to vector<8x8x32xbf16>
    %20 = arith.mulf %19, %18 : vector<8x8x32xbf16>
    %21 = arith.addf %16, %20 : vector<8x8x32xbf16>
    %cst_8 = arith.constant 7.968750e-01 : bf16
    %22 = vector.broadcast %cst_8 : bf16 to vector<8x8x32xbf16>
    %23 = arith.mulf %22, %21 : vector<8x8x32xbf16>
    %24 = math.tanh %23 : vector<8x8x32xbf16>
    %cst_9 = arith.constant 1.000000e+00 : bf16
    %25 = vector.broadcast %cst_9 : bf16 to vector<8x8x32xbf16>
    %26 = arith.addf %25, %24 : vector<8x8x32xbf16>
    %cst_10 = arith.constant 5.000000e-01 : bf16
    %27 = vector.broadcast %cst_10 : bf16 to vector<8x8x32xbf16>
    %28 = arith.mulf %27, %26 : vector<8x8x32xbf16>
    %29 = arith.mulf %16, %28 : vector<8x8x32xbf16>
    %30 = vector.shape_cast %29 : vector<8x8x32xbf16> to vector<64x32xbf16>
    %c0_11 = arith.constant 0 : index
    %c0_12 = arith.constant 0 : index
    %31 = vector.load %arg10[%c0_11, %c0_12] : memref<32x1xf32, #tpu.memory_space<vmem>>, vector<32x1xf32>
    %32 = arith.truncf %31 : vector<32x1xf32> to vector<32x1xbf16>
    %cst_13 = arith.constant dense<0.000000e+00> : vector<64x1xf32>
    %33 = tpu.matmul %30, %32, %cst_13 {dimension_numbers = #tpu.dot_dimension_numbers<[1], [0], [0], [1], [0, 0, 1, 1], [], []>} : vector<64x32xbf16>, vector<32x1xbf16>, vector<64x1xf32> -> vector<64x1xf32>
    %34 = vector.shape_cast %33 : vector<64x1xf32> to vector<8x8xf32>
    %c0_14 = arith.constant 0 : index
    %c0_15 = arith.constant 0 : index
    %35 = vector.load %arg11[%c0_14, %c0_15] : memref<1x1xf32, #tpu.memory_space<vmem>>, vector<1x1xf32>
    %36 = vector.broadcast %35 : vector<1x1xf32> to vector<8x8xf32>
    %37 = arith.addf %34, %36 : vector<8x8xf32>
    %38 = arith.negf %37 : vector<8x8xf32>
    %39 = math.exp %38 : vector<8x8xf32>
    %cst_16 = arith.constant 1.000000e+00 : f32
    %40 = vector.broadcast %cst_16 : f32 to vector<8x8xf32>
    %41 = arith.addf %40, %39 : vector<8x8xf32>
    %42 = arith.divf %40, %41 : vector<8x8xf32>
    %c0_17 = arith.constant 0 : index
    %c0_18 = arith.constant 0 : index
    %c0_19 = arith.constant 0 : index
    %43 = vector.load %arg13[%c0_17, %c0_18, %c0_19] : memref<1x8x8xf32, #tpu.memory_space<vmem>>, vector<1x8x8xf32>
    %44 = vector.shape_cast %43 : vector<1x8x8xf32> to vector<8x8xf32>
    %45 = vector.shape_cast %42 : vector<8x8xf32> to vector<1x8x8xf32>
    tpu.vector_store %arg13[%c0_17, %c0_18, %c0_19], %45 {strides = array<i32>} : memref<1x8x8xf32, #tpu.memory_space<vmem>>, vector<1x8x8xf32>,
    return
  }
  func.func @transform_0(%arg0: i32, %arg1: i32, %arg2: i32) -> (i32, i32, i32) {
    %c0_i32 = arith.constant 0 : i32
    %c0_i32_0 = arith.constant 0 : i32
    return %arg0, %arg1, %c0_i32 : i32, i32, i32
  }
  func.func @transform_1(%arg0: i32, %arg1: i32, %arg2: i32) -> (i32, i32, i32) {
    %c0_i32 = arith.constant 0 : i32
    %c0_i32_0 = arith.constant 0 : i32
    return %arg0, %arg2, %c0_i32 : i32, i32, i32
  }
  func.func @transform_2(%arg0: i32, %arg1: i32, %arg2: i32) -> (i32, i32) {
    %c0_i32 = arith.constant 0 : i32
    %c0_i32_0 = arith.constant 0 : i32
    %c0_i32_1 = arith.constant 0 : i32
    return %c0_i32, %c0_i32_0 : i32, i32
  }
  func.func @transform_3(%arg0: i32, %arg1: i32, %arg2: i32) -> (i32, i32) {
    %c0_i32 = arith.constant 0 : i32
    %c0_i32_0 = arith.constant 0 : i32
    %c0_i32_1 = arith.constant 0 : i32
    return %c0_i32, %c0_i32_0 : i32, i32
  }
  func.func @transform_4(%arg0: i32, %arg1: i32, %arg2: i32) -> (i32, i32) {
    %c0_i32 = arith.constant 0 : i32
    %c0_i32_0 = arith.constant 0 : i32
    %c0_i32_1 = arith.constant 0 : i32
    return %c0_i32, %c0_i32_0 : i32, i32
  }
  func.func @transform_5(%arg0: i32, %arg1: i32, %arg2: i32) -> (i32, i32) {
    %c0_i32 = arith.constant 0 : i32
    %c0_i32_0 = arith.constant 0 : i32
    %c0_i32_1 = arith.constant 0 : i32
    return %c0_i32, %c0_i32_0 : i32, i32
  }
  func.func @transform_6(%arg0: i32, %arg1: i32, %arg2: i32) -> (i32, i32) {
    %c0_i32 = arith.constant 0 : i32
    %c0_i32_0 = arith.constant 0 : i32
    %c0_i32_1 = arith.constant 0 : i32
    return %c0_i32, %c0_i32_0 : i32, i32
  }
  func.func @transform_7(%arg0: i32, %arg1: i32, %arg2: i32) -> (i32, i32) {
    %c0_i32 = arith.constant 0 : i32
    %c0_i32_0 = arith.constant 0 : i32
    %c0_i32_1 = arith.constant 0 : i32
    return %c0_i32, %c0_i32_0 : i32, i32
  }
  func.func @transform_8(%arg0: i32, %arg1: i32, %arg2: i32) -> (i32, i32) {
    %c0_i32 = arith.constant 0 : i32
    %c0_i32_0 = arith.constant 0 : i32
    %c0_i32_1 = arith.constant 0 : i32
    return %c0_i32, %c0_i32_0 : i32, i32
  }
  func.func @transform_9(%arg0: i32, %arg1: i32, %arg2: i32) -> (i32, i32, i32) {
    %c0_i32 = arith.constant 0 : i32
    %c0_i32_0 = arith.constant 0 : i32
    return %arg0, %arg1, %c0_i32 : i32, i32, i32
  }
  func.func @transform_10(%arg0: i32, %arg1: i32, %arg2: i32) -> (i32, i32, i32) {
    %c0_i32 = arith.constant 0 : i32
    return %arg0, %arg1, %arg2 : i32, i32, i32
  }
}

</mosaic_0001>

<bundles_post_ra>
// kernel: tpu_custom_call.1
= control target key start
LH: loop header
LB: loop body
LE: loop exit
PB: predicated region body
PF: predicated region fallthrough
CT: control target
= control target key end

     0   :  { %s2644_s0 = inlined_call_operand.hbm [shape: f32[2,8,32], index: 0, kind: input, shape index: {}]   ;;  %s2645_s1 = inlined_call_operand.hbm [shape: f32[2,8,32], index: 1, kind: input, shape index: {}]   ;;  %s2646_s2 = inlined_call_operand.hbm [shape: f32[32,4], index: 2, kind: input, shape index: {}]   ;;  %s2647_s3 = inlined_call_operand.hbm [shape: f32[1,4], index: 3, kind: input, shape index: {}]   ;;  %s2648_s4 = inlined_call_operand.hbm [shape: f32[32,32], index: 4, kind: input, shape index: {}]   ;;  %s2649_s5 = inlined_call_operand.hbm [shape: f32[32,32], index: 5, kind: input, shape index: {}]   ;;  %s2650_s6 = inlined_call_operand.hbm [shape: f32[1,32], index: 6, kind: input, shape index: {}]   ;;  %s2651_s7 = inlined_call_operand.hbm [shape: f32[32,1], index: 7, kind: input, shape index: {}]   ;;  %s2652_s8 = inlined_call_operand.<no memory space> [shape: f32[1,1], index: 8, kind: input, shape index: {}]   ;;  %s2653_s9 = inlined_call_operand.hbm [shape: f32[2,8,4], index: 9, kind: output, shape index: {0}]   ;;  %s2654_s10 = inlined_call_operand.hbm [shape: f32[2,8,8], index: 10, kind: output, shape index: {1}]  }
   0x1   :  { %2662 = sst [smem:[#allocation30_spill]] %s2646_s2  ;;  %v16_v0 = vstv %s2652_s8 }
   0x2   :  { %2663 = sst [smem:[#allocation31_spill]] %s2647_s3  ;;  %17 = vst [vmem:[#allocation3] sm:$0x1] %v16_v0 }
   0x3   :  { %2664 = sst [smem:[#allocation32_spill]] %s2648_s4 }
   0x4   :  { %2665 = sst [smem:[#allocation33_spill]] %s2649_s5 }
   0x5   :  { %2666 = sst [smem:[#allocation34_spill]] %s2650_s6 }
   0x6   :  { %2667 = sst [smem:[#allocation35_spill]] %s2653_s9 }
   0x7   :  { %2668 = sst [smem:[#allocation36_spill]] %s2654_s10 }
   0x8   :  { %18 = vsyncpa [#allocation5], 0 }
   0x9   :  { %20 = vsyncpa [#allocation5 + $0x1], 0 }
   0xa   :  { %21 = vsyncpa [#allocation8], 0 }
   0xb   :  { %23 = vsyncpa [#allocation8 + $0x1], 0 }
   0xc   :  { %24 = vsyncpa [#allocation11], 0 }
   0xd   :  { %25 = vsyncpa [#allocation14], 0 }
   0xe   :  { %26 = vsyncpa [#allocation17], 0 }
   0xf   :  { %27 = vsyncpa [#allocation6], 0 }
  0x10   :  { %29 = vsyncpa [#allocation6 + $0x1], 0 }
  0x11   :  { %30 = vsyncpa [#allocation20], 0 }
  0x12   :  { %32 = vsyncpa [#allocation20 + $0x1], 0  ;;  %s2147_s15 = smov 0   ;;  %s2149_s16 = smov 0  }
  0x13   :  { %s2151_s17 = smov 0   ;;  %s2153_s18 = smov 0  }
  0x14   :  { %s2155_s8 = smov 0   ;;  %s2157_s19 = smov 0  }
  0x15 LB: > { %2669 = sst [smem:[#allocation29_spill]] %s2063_s18  ;;  %s2178_s20 = sadd.s32 4294967295, %s2071_s19   ;;  %s2071_s19 = sphi %s2157_s19, %s38_s19   ;;  %s2067_s8 = sphi %s2155_s8, %s2704_s8   ;;  %s2063_s18 = sphi %s2153_s18, %s2703_s18   ;;  %s2059_s17 = sphi %s2151_s17, %s2702_s17   ;;  %s2055_s16 = sphi %s2149_s16, %s2701_s16   ;;  %s2051_s15 = sphi %s2147_s15, %s2700_s15  }
  0x16   : > { %p1414_p0 = scmp.ge.s32.totalorder %s2071_s19, 1  ;;  %p2658_p1 = scmp.eq.s32.totalorder %s2178_s20, 0 }
  0x17   : > { %p323_p2 = scmp.lt.s32.totalorder %s2071_s19, 3  ;;  %s2073_s22 = smov [#allocation9]  }
  0x18   : > { %s335_s23 = sshll.u32 %s2073_s22, 4  ;;  %s2074_s25 = smov [#allocation10]   ;;  %s2187_s23 = int_to_ptr.vmem [resolvable:$true] %s335_s23 }
  0x19   : > { %p2183_p3 = pnand %p1414_p0, %p323_p2  ;;  %s349_s26 = sshll.u32 %s2074_s25, 4  ;;  %s2198_s26 = int_to_ptr.vmem [resolvable:$true] %s349_s26 }
  0x1a   : > { %s2075_s27 = smov [#allocation13]   ;;  %s2672_s2 = sld [smem:[#allocation30_spill]] }
  0x1b   : > { %s2670_s21 = scalar_select %p2183_p3, 1, 0 }
  0x1c   : > { %p1552_p4 = pneg %p2183_p3  ;;  %s2200_s28 = sshll.u32 %s2075_s27, 4  ;;  %s373_s28 = int_to_ptr.vmem [resolvable:$true] %s2200_s28 }
  0x1e   : > { %p2194_p6 = pnand %p1552_p4, %p2658_p1 }
  0x20   : > { %s1709_s11 = scalar_lea.hbm %s2672_s2, 512  ;;  %p2210_p8 = pneg %p2194_p6 }
  0x21   : > { %p1710_p7 = scmp.ne.s32.totalorder %s2672_s2, %s1709_s11  ;;  %p1716_p11 = scmp.lt.u32.totalorder %s1709_s11, %s2672_s2 }
  0x23   : > { %p1712_p9 = pnand %p2210_p8, %p1710_p7 }
  0x25   : > { %p1713_p10 = pneg %p1712_p9 }
  0x27   : > { %p1718_p12 = pnand %p1716_p11, %p1713_p10 }
  0x29   : > { %1721 = shalt.err (!%p1718_p12)
}
  0x2a   : > { %s1722_s27 = scalar_lea.vmem %s2187_s23, 512  ;;  %p1730_p4 = scmp.lt.s32.totalorder %s2187_s23, %s2187_s23 }
  0x2b   : > { %p1723_p13 = scmp.ne.s32.totalorder %s2187_s23, %s1722_s27  ;;  %p1731_p5 = scmp.lt.s32.totalorder %s1722_s27, %s1722_s27 }
  0x2d   : > { %p1725_p0 = pnand %p1723_p13, %p2210_p8  ;;  %p1732_p7 = por %p1731_p5, %p1730_p4 }
  0x2f   : > { %p1726_p2 = pneg %p1725_p0 }
  0x31   : > { %p1733_p9 = pnand %p1732_p7, %p1726_p2 }
  0x33   : > { %1736 = shalt.err (!%p1733_p9)
}
  0x34   : > { %s2076_s29 = smov 128   ;;  %s2077_s30 = smov 8  }
  0x35   : > { %1555 = dma.hbm_to_vmem [thread:$0]  (!%p2194_p6), %s2672_s2, 512, %s2187_s23, [#allocation8], %s2076_s29, %s2076_s29, %s2077_s30  }
  0x36   : > { %s2674_s3 = sld [smem:[#allocation31_spill]] }
  0x3c   : > { %s1737_s25 = scalar_lea.hbm %s2674_s3, 16 }
  0x3d   : > { %p1738_p5 = scmp.ne.s32.totalorder %s2674_s3, %s1737_s25  ;;  %p1744_p12 = scmp.lt.u32.totalorder %s1737_s25, %s2674_s3 }
  0x3f   : > { %p1740_p10 = pnand %p1738_p5, %p2210_p8 }
  0x41   : > { %p1741_p11 = pneg %p1740_p10 }
  0x43   : > { %p1746_p13 = pnand %p1744_p12, %p1741_p11 }
  0x45   : > { %1749 = shalt.err (!%p1746_p13)
}
  0x46   : > { %s1750_s23 = scalar_lea.vmem %s2198_s26, 16  ;;  %s1757_s10 = scalar_lea.vmem %s2198_s26, 32 }
  0x47   : > { %p1751_p0 = scmp.ne.s32.totalorder %s2198_s26, %s1750_s23  ;;  %p1758_p7 = scmp.lt.s32.totalorder %s2198_s26, %s2198_s26 }
  0x48   : > { %p1759_p9 = scmp.lt.s32.totalorder %s1757_s10, %s1750_s23 }
  0x49   : > { %p1753_p2 = pnand %p1751_p0, %p2210_p8 }
  0x4a   : > { %p1760_p5 = por %p1759_p9, %p1758_p7 }
  0x4b   : > { %p1754_p4 = pneg %p1753_p2 }
  0x4d   : > { %p1761_p10 = pnand %p1760_p5, %p1754_p4 }
  0x4f   : > { %1764 = shalt.err (!%p1761_p10)
}
  0x50   : > { %1558 = dma.hbm_to_vmem [thread:$0]  (!%p2194_p6), %s2674_s3, 16, %s2198_s26, [#allocation11]  }
  0x51   : > { %s2675_s5 = sld [smem:[#allocation33_spill]] }
  0x57   : > { %s1765_s13 = scalar_lea.hbm %s2675_s5, 512 }
  0x58   : > { %p1766_p11 = scmp.ne.s32.totalorder %s2675_s5, %s1765_s13  ;;  %p1772_p0 = scmp.lt.u32.totalorder %s1765_s13, %s2675_s5 }
  0x5a   : > { %p1768_p12 = pnand %p1766_p11, %p2210_p8 }
  0x5c   : > { %p1769_p13 = pneg %p1768_p12 }
  0x5e   : > { %p1774_p2 = pnand %p1772_p0, %p1769_p13 }
  0x60   : > { %1777 = shalt.err (!%p1774_p2)
}
  0x61   : > { %s1778_s10 = scalar_lea.vmem %s373_s28, 512  ;;  %p1786_p5 = scmp.lt.s32.totalorder %s373_s28, %s373_s28 }
  0x62   : > { %p1779_p4 = scmp.ne.s32.totalorder %s373_s28, %s1778_s10  ;;  %p1787_p10 = scmp.lt.s32.totalorder %s1778_s10, %s1778_s10 }
  0x64   : > { %p1781_p7 = pnand %p1779_p4, %p2210_p8  ;;  %p1788_p1 = por %p1787_p10, %p1786_p5 }
  0x66   : > { %p1782_p9 = pneg %p1781_p7 }
  0x68   : > { %p1789_p3 = pnand %p1788_p1, %p1782_p9 }
  0x6a   : > { %1792 = shalt.err (!%p1789_p3)
}
  0x6b   : > { %1564 = dma.hbm_to_vmem [thread:$0]  (!%p2194_p6), %s2675_s5, 512, %s373_s28, [#allocation14], %s2076_s29, %s2076_s29, %s2077_s30  }
  0x6c   : > { %s2078_s18 = smov [#allocation12]   ;;  %s2079_s12 = smov [#allocation15]  }
  0x6d   : > { %s359_s11 = sshll.u32 %s2078_s18, 4  ;;  %s386_s13 = sshll.u32 %s2079_s12, 4  ;;  %s360_s11 = int_to_ptr.vmem [resolvable:$true] %s359_s11  ;;  %s387_s13 = int_to_ptr.vmem [resolvable:$true] %s386_s13 }
  0x6e   : > { %s2676_s4 = sld [smem:[#allocation32_spill]] }
  0x74   : > { %s1793_s27 = scalar_lea.hbm %s2676_s4, 512 }
  0x75   : > { %p1794_p1 = scmp.ne.s32.totalorder %s2676_s4, %s1793_s27  ;;  %p1800_p12 = scmp.lt.u32.totalorder %s1793_s27, %s2676_s4 }
  0x77   : > { %p1796_p3 = pnand %p1794_p1, %p2210_p8 }
  0x79   : > { %p1797_p11 = pneg %p1796_p3 }
  0x7b   : > { %p1802_p13 = pnand %p1800_p12, %p1797_p11 }
  0x7d   : > { %1805 = shalt.err (!%p1802_p13)
}
  0x7e   : > { %s1806_s28 = scalar_lea.vmem %s360_s11, 512  ;;  %p1814_p7 = scmp.lt.s32.totalorder %s360_s11, %s360_s11 }
  0x7f   : > { %p1807_p0 = scmp.ne.s32.totalorder %s360_s11, %s1806_s28  ;;  %p1815_p9 = scmp.lt.s32.totalorder %s1806_s28, %s1806_s28 }
  0x81   : > { %p1809_p2 = pnand %p1807_p0, %p2210_p8  ;;  %p1816_p5 = por %p1815_p9, %p1814_p7 }
  0x83   : > { %p1810_p4 = pneg %p1809_p2 }
  0x85   : > { %p1817_p10 = pnand %p1816_p5, %p1810_p4 }
  0x87   : > { %1820 = shalt.err (!%p1817_p10)
}
  0x88   : > { %1561 = dma.hbm_to_vmem [thread:$0]  (!%p2194_p6), %s2676_s4, 512, %s360_s11, [#allocation11], %s2076_s29, %s2076_s29, %s2077_s30  }
  0x89   : > { %s2677_s6 = sld [smem:[#allocation34_spill]] }
  0x8f   : > { %s1821_s22 = scalar_lea.hbm %s2677_s6, 16 }
  0x90   : > { %p1822_p1 = scmp.ne.s32.totalorder %s2677_s6, %s1821_s22  ;;  %p1828_p12 = scmp.lt.u32.totalorder %s1821_s22, %s2677_s6 }
  0x92   : > { %p1824_p3 = pnand %p1822_p1, %p2210_p8 }
  0x94   : > { %p1825_p11 = pneg %p1824_p3 }
  0x96   : > { %p1830_p13 = pnand %p1828_p12, %p1825_p11 }
  0x98   : > { %1833 = shalt.err (!%p1830_p13)
}
  0x99   : > { %s1834_s26 = scalar_lea.vmem %s387_s13, 16  ;;  %s1841_s11 = scalar_lea.vmem %s387_s13, 32 }
  0x9a   : > { %p1835_p0 = scmp.ne.s32.totalorder %s387_s13, %s1834_s26  ;;  %p1842_p7 = scmp.lt.s32.totalorder %s387_s13, %s387_s13 }
  0x9b   : > { %p1843_p9 = scmp.lt.s32.totalorder %s1841_s11, %s1834_s26 }
  0x9c   : > { %p1837_p2 = pnand %p1835_p0, %p2210_p8 }
  0x9d   : > { %p1844_p5 = por %p1843_p9, %p1842_p7 }
  0x9e   : > { %p1838_p4 = pneg %p1837_p2 }
  0xa0   : > { %p1845_p10 = pnand %p1844_p5, %p1838_p4 }
  0xa2   : > { %1848 = shalt.err (!%p1845_p10)
}
  0xa3   : > { %1567 = dma.hbm_to_vmem [thread:$0]  (!%p2194_p6), %s2677_s6, 16, %s387_s13, [#allocation14]  }
  0xa4   : > { %s2080_s9 = smov [#allocation16]   ;;  %s1849_s25 = scalar_lea.hbm %s2651_s7, 512 }
  0xa5   : > { %s396_s18 = sshll.u32 %s2080_s9, 4  ;;  %p1850_p1 = scmp.ne.s32.totalorder %s2651_s7, %s1849_s25  ;;  %s397_s18 = int_to_ptr.vmem [resolvable:$true] %s396_s18 }
  0xa6   : > { %p1856_p12 = scmp.lt.u32.totalorder %s1849_s25, %s2651_s7 }
  0xa7   : > { %p1852_p3 = pnand %p1850_p1, %p2210_p8 }
  0xa9   : > { %p1853_p11 = pneg %p1852_p3 }
  0xab   : > { %p1858_p13 = pnand %p1856_p12, %p1853_p11 }
  0xad   : > { %1861 = shalt.err (!%p1858_p13)
}
  0xae   : > { %s1862_s13 = scalar_lea.vmem %s397_s18, 512  ;;  %p1870_p7 = scmp.lt.s32.totalorder %s397_s18, %s397_s18 }
  0xaf   : > { %p1863_p0 = scmp.ne.s32.totalorder %s397_s18, %s1862_s13  ;;  %p1871_p9 = scmp.lt.s32.totalorder %s1862_s13, %s1862_s13 }
  0xb1   : > { %p1865_p2 = pnand %p1863_p0, %p2210_p8  ;;  %p1872_p5 = por %p1871_p9, %p1870_p7 }
  0xb3   : > { %p1866_p4 = pneg %p1865_p2 }
  0xb5   : > { %p1873_p10 = pnand %p1872_p5, %p1866_p4 }
  0xb7   : > { %1876 = shalt.err (!%p1873_p10)
}
  0xb8   : > { %1570 = dma.hbm_to_vmem [thread:$0]  (!%p2194_p6), %s2651_s7, 512, %s397_s18, [#allocation17], %s2076_s29, %s2076_s29, %s2077_s30  }
  0xb9   : > { %s1413_s24 = sadd.s32 4294967294, %s2071_s19   ;;  %s57_s14 = sadd.s32 1, %s2067_s8 }
  0xba   : > { %p59_p8 = scmp.ge.s32.totalorder %s57_s14, 2  ;;  %s66_s2 = sadd.s32 1, %s2059_s17 }
  0xbb   : > { %p73_p1 = scmp.ne.s32.totalorder %s2059_s17, %s2055_s16  ;;  %p74_p3 = scmp.eq.s32.totalorder %s2071_s19, 0 }
  0xbc   : > { %s2706_s14 = smov (%p59_p8, %s57_s14), 0  ;;  %p79_p12 = scmp.ne.s32.totalorder %s2055_s16, %s2051_s15 }
  0xbd   : > { %p2348_p11 = por %p74_p3, %p73_p1  ;;  %s61_s29 = ssub.s32 %s2067_s8, %s2706_s14 }
  0xbe   : > { %p280_p6 = scmp.eq.s32.totalorder %s2178_s20, 1  ;;  %p64_p13 = scmp.eq.s32.totalorder %s61_s29, 0 }
  0xbf   : > { %p2679_p0 = scmp.eq.s32.totalorder %s2178_s20, 0  ;;  %p286_p7 = scmp.eq.s32.totalorder %s1413_s24, 1 }
  0xc0   : > { %p2363_p4 = por %p280_p6, %p73_p1  ;;  %p1591_p5 = scmp.lt.s32.totalorder %s2071_s19, 2 }
  0xc1   : > { %p2359_p2 = por %p2679_p0, %p79_p12  ;;  %p2370_p9 = por %p286_p7, %p79_p12 }
  0xc2   : > { %s2681_s18 = scalar_select %p2363_p4, 1, 0 }
  0xc3   : > { %s2680_s30 = scalar_select %p2359_p2, 1, 0 }
  0xc4   : > { %s2368_s12 = scalar_select %p64_p13, %s2059_s17, %s66_s2  }
  0xc5   : > { %s2682_s22 = scalar_select %p2370_p9, 1, 0 }
  0xc6   : > { %s413_s25 = sand.u32 1, %s2059_s17   ;;  %s1423_s27 = sshll.u32 %s2067_s8, 7 }
  0xc7   : > { %s2377_s23 = sshll.u32 %s413_s25, 3  ;;  %s2382_s13 = scalar_lea.hbm %s2644_s0, %s1423_s27 }
  0xc8   : > { %s417_s11 = scalar_lea.vmem [#allocation4], %s2377_s23  ;;  %p2387_p10 = pnand %p1591_p5, %p2348_p11 }
  0xc9   : > { %s425_s28 = sshll.u32 %s417_s11, 4  ;;  %s2396_s10 = scalar_lea.hbm %s2645_s1, %s1423_s27  ;;  %s2391_s28 = int_to_ptr.vmem [resolvable:$true] %s425_s28 }
  0xca   : > { %s414_s26 = scalar_lea.sflag [#allocation5], %s413_s25  ;;  %s1877_s3 = scalar_lea.hbm %s2382_s13, 128 }
  0xcb   : > { %p1878_p8 = scmp.ne.s32.totalorder %s2382_s13, %s1877_s3  ;;  %p1879_p1 = pneg %p2387_p10 }
  0xcc   : > { %s1882_s4 = scalar_lea.hbm %s2644_s0, 256  ;;  %p1883_p12 = scmp.lt.u32.totalorder %s2382_s13, %s2644_s0 }
  0xcd   : > { %p1880_p3 = pnand %p1879_p1, %p1878_p8  ;;  %p1884_p6 = scmp.lt.u32.totalorder %s1882_s4, %s1877_s3 }
  0xce   : > { %p1886_p0 = scmp.lt.u32.totalorder %s1877_s3, %s2382_s13 }
  0xcf   : > { %p1881_p11 = pneg %p1880_p3  ;;  %p1885_p13 = por %p1884_p6, %p1883_p12 }
  0xd1   : > { %p1887_p7 = por %p1886_p0, %p1885_p13 }
  0xd3   : > { %p1888_p5 = pnand %p1887_p7, %p1881_p11 }
  0xd5   : > { %1891 = shalt.err (!%p1888_p5)
}
  0xd6   : > { %s1892_s25 = scalar_lea.vmem %s2391_s28, 128  ;;  %s2081_s27 = smov [#allocation4]  }
  0xd7   : > { %p1893_p8 = scmp.ne.s32.totalorder %s2391_s28, %s1892_s25  ;;  %s1897_s2 = sshll.u32 %s2081_s27, 4  ;;  %s1898_s2 = int_to_ptr.vmem [resolvable:$false] %s1897_s2 }
  0xd8   : > { %s1899_s5 = scalar_lea.vmem %s1898_s2, 256  ;;  %p1900_p4 = scmp.lt.s32.totalorder %s2391_s28, %s1898_s2 }
  0xd9   : > { %p1895_p3 = pnand %p1893_p8, %p1879_p1  ;;  %p1901_p12 = scmp.lt.s32.totalorder %s1899_s5, %s1892_s25 }
  0xdb   : > { %p1896_p9 = pneg %p1895_p3  ;;  %p1902_p6 = por %p1901_p12, %p1900_p4 }
  0xdd   : > { %p1903_p13 = pnand %p1902_p6, %p1896_p9 }
  0xdf   : > { %1906 = shalt.err (!%p1903_p13)
}
  0xe0   : > { %1574 = dma.hbm_to_vmem [thread:$0]  (!%p2387_p10), %s2382_s13, 128, %s2391_s28, %s414_s26  }
  0xe1   : > { %s432_s3 = sand.u32 1, %s2071_s19   ;;  %s436_s4 = scalar_lea.vmem [#allocation7], %s2377_s23 }
  0xe2   : > { %s444_s6 = sshll.u32 %s436_s4, 4  ;;  %s433_s29 = scalar_lea.sflag [#allocation8], %s432_s3  ;;  %s445_s6 = int_to_ptr.vmem [resolvable:$true] %s444_s6 }
  0xe3   : > { %s1907_s9 = scalar_lea.hbm %s2396_s10, 128  ;;  %s1912_s27 = scalar_lea.hbm %s2645_s1, 256 }
  0xe4   : > { %p1908_p4 = scmp.ne.s32.totalorder %s2396_s10, %s1907_s9  ;;  %p1913_p0 = scmp.lt.u32.totalorder %s2396_s10, %s2645_s1 }
  0xe5   : > { %p1914_p7 = scmp.lt.u32.totalorder %s1912_s27, %s1907_s9  ;;  %p1916_p8 = scmp.lt.u32.totalorder %s1907_s9, %s2396_s10 }
  0xe6   : > { %p1910_p9 = pnand %p1908_p4, %p1879_p1 }
  0xe7   : > { %p1915_p5 = por %p1914_p7, %p1913_p0 }
  0xe8   : > { %p1911_p11 = pneg %p1910_p9 }
  0xe9   : > { %p1917_p3 = por %p1916_p8, %p1915_p5 }
  0xeb   : > { %p1918_p12 = pnand %p1917_p3, %p1911_p11 }
  0xed   : > { %1921 = shalt.err (!%p1918_p12)
}
  0xee   : > { %s1922_s23 = scalar_lea.vmem %s445_s6, 128  ;;  %s2082_s13 = smov [#allocation7]  }
  0xef   : > { %p1923_p6 = scmp.ne.s32.totalorder %s445_s6, %s1922_s23  ;;  %s1927_s28 = sshll.u32 %s2082_s13, 4  ;;  %s1928_s28 = int_to_ptr.vmem [resolvable:$false] %s1927_s28 }
  0xf0   : > { %s1929_s26 = scalar_lea.vmem %s1928_s28, 256  ;;  %p1930_p9 = scmp.lt.s32.totalorder %s445_s6, %s1928_s28 }
  0xf1   : > { %p1925_p13 = pnand %p1923_p6, %p1879_p1  ;;  %p1931_p2 = scmp.lt.s32.totalorder %s1929_s26, %s1922_s23 }
  0xf3   : > { %p1926_p4 = pneg %p1925_p13  ;;  %p1932_p0 = por %p1931_p2, %p1930_p9 }
  0xf5   : > { %p1933_p7 = pnand %p1932_p0, %p1926_p4 }
  0xf7   : > { %1936 = shalt.err (!%p1933_p7)
}
  0xf8   : > { %1577 = dma.hbm_to_vmem [thread:$0]  (!%p2387_p10), %s2396_s10, 128, %s445_s6, %s433_s29  }
  0xf9   : > { %p2684_p11 = scmp.ne.s32.totalorder %s2670_s21, 0 }
  0xfa   : > { %s2447_s3 = sand.u32 (!%p2684_p11), 1, %s2055_s16   ;;  %p2685_p2 = scmp.ne.s32.totalorder (!%p2684_p11), %s2680_s30, 0 }
  0xfb   : > { %453 = sbr.rel (%p2684_p11) target bundleno = 957 (0x3bd), region = 56  ;;  %s2450_s4 = sshll.u32 (!%p2684_p11), %s2447_s3, 3 }
  0xfc   : > { %s456_s9 = scalar_lea.sflag (!%p2684_p11), [#allocation5], %s2447_s3  ;;  %s459_s11 = scalar_lea.vmem (!%p2684_p11), [#allocation4], %s2450_s4 }
 0x102   : > { %2018 = dma.done.wait (%p2685_p2), %s456_s9, 128  }
 0x103   : > { %2020 = vsyncadd (%p2685_p2), %s456_s9, 4294967168  ;;  %s464_s21 = sand.u32 1, %s2178_s20   ;;  %s468_s10 = scalar_lea.vmem [#allocation7], %s2450_s4 }
 0x104   : > { %s465_s24 = scalar_lea.sflag [#allocation8], %s464_s21 }
 0x105   : > { %2022 = dma.done.wait (%p2685_p2), %s465_s24, 128  }
 0x106   : > { %2024 = vsyncadd (%p2685_p2), %s465_s24, 4294967168  ;;  %p2686_p10 = scmp.eq.s32.totalorder %s2178_s20, 0 }
 0x108   : > { %2026 = dma.done.wait (%p2686_p10), [#allocation8], 512   ;;  %p2687_p1 = pmov %p2686_p10 }
 0x10a   : > { %2028 = vsyncadd (%p2687_p1), [#allocation8], 4294966784  ;;  %p2688_p5 = pmov %p2687_p1 }
 0x10b   : > { %p2689_p8 = pmov %p2687_p1 }
 0x10c   : > { %2030 = dma.done.wait (%p2688_p5), [#allocation11], 528  }
 0x10d   : > { %2032 = vsyncadd (%p2689_p8), [#allocation11], 4294966768  ;;  %p2690_p3 = pmov %p2687_p1 }
 0x10e   : > { %p2691_p12 = pmov %p2687_p1 }
 0x10f   : > { %2034 = dma.done.wait (%p2690_p3), [#allocation14], 528  }
 0x110   : > { %2036 = vsyncadd (%p2691_p12), [#allocation14], 4294966768  ;;  %p2692_p6 = pmov %p2687_p1 }
 0x111   : > { %p2693_p13 = pmov %p2687_p1 }
 0x112   : > { %2038 = dma.done.wait (%p2692_p6), [#allocation17], 512  }
 0x113   : > { %2040 = vsyncadd (%p2693_p13), [#allocation17], 4294966784  ;;  %v2083_v1 = vmov 0.0   ;;  %vm2084_vm0 = vmmov 0   ;;  %v609_v2 = vld [vmem:[#allocation12] sm:$0xff]  ;;  %v610_v3 = vld [vmem:[#allocation12 + $0x8] sm:$0xff]  ;;  %v721_v39 = vlaneseq }
 0x114   : > { %1492 = vmatprep.subr.bf16.mxu1 %v2083_v1  ;;  %1496 = vmatprep.mubr.msk.bf16.mxu1 %vm2084_vm0, %v2083_v1  ;;  %v611_v4 = vld [vmem:[#allocation12 + $0x10] sm:$0xff]  ;;  %v613_v5 = vpack.c.bf16 %v610_v3, %v609_v2  ;;  %v612_v6 = vld [vmem:[#allocation12 + $0x18] sm:$0xff]  ;;  %v551_v8 = vld [vmem:[#allocation9 + $0x8] sm:$0xff]  ;;  %vm563_vm1 = vcmask 261120   ;;  %v2085_v31 = vmov 0   ;;  %vm607_vm2 = vcmask 31744  }
 0x115   : > { %1484 = vmatprep.subr.bf16.mxu0 %v2083_v1  ;;  %1488 = vmatprep.mubr.msk.bf16.mxu0 %vm2084_vm0, %v2083_v1  ;;  %v550_v7 = vld [vmem:[#allocation9] sm:$0xff]  ;;  %v552_v9 = vld [vmem:[#allocation9 + $0x10] sm:$0xff]  ;;  %v553_v10 = vld [vmem:[#allocation9 + $0x18] sm:$0xff]  ;;  %v614_v11 = vpack.c.bf16 %v612_v6, %v611_v4  ;;  %v2086_v37 = vmov 1966171168   ;;  %v2492_v48 = vshrl.u32 %v721_v39, 7 }
 0x116   : > { %1493 = vmatpush3.bf16.msra.mxu1 %v613_v5  ;;  %v548_v12 = vld [vmem:[%s459_s11] sm:$0xff]  ;;  %v554_v13 = vpack.c.bf16 %v551_v8, %v550_v7  ;;  %v555_v14 = vpack.c.bf16 %v553_v10, %v552_v9  ;;  %v667_v19 = vld [vmem:[#allocation13 + $0x10] sm:$0xff]  ;;  %v1454_v30 = vld [vmem:[#allocation3] ss:$0 sm:$0xff]  ;;  %1659 = vset.pattern.permute.xlu0 %v2085_v31  ;;  %v719_v38 = vunpack.c.l.s4 %v2086_v37  ;;  %s531_s20 = scalar_lea.vmem [#allocation18], %s2450_s4  ;;  %s2694_s30 = sld [smem:[#allocation29_spill]] }
 0x117   : > { %1494 = vmatprep.subr.bf16.mxu1 %v2083_v1  ;;  %v549_v15 = vpack.c.bf16 %v548_v12, %v548_v12  ;;  %v665_v16 = vld [vmem:[#allocation13] sm:$0xff]  ;;  %v666_v17 = vld [vmem:[#allocation13 + $0x8] sm:$0xff]  ;;  %v668_v20 = vld [vmem:[#allocation13 + $0x18] sm:$0xff]  ;;  %1660 = vset.pattern.permute.xlu1 %v2085_v31  ;;  %v761_v59 = vsub.s32 0, %v2492_v48  ;;  %s2695_s27 = sld [smem:[#allocation35_spill]]  ;;  %s1199_s5 = sshll.u32 %s531_s20, 4  ;;  %s1200_s5 = int_to_ptr.vmem [resolvable:$true] %s1199_s5 }
 0x118   : > { %1485 = vmatpush3.bf16.msra.mxu0 %v554_v13  ;;  %v669_v18 = vpack.c.bf16 %v666_v17, %v665_v16  ;;  %v670_v21 = vpack.c.bf16 %v668_v20, %v667_v19  ;;  %v663_v22 = vld [vmem:[%s468_s10] sm:$0xff]  ;;  %v927_v24 = vld [vmem:[#allocation16] sm:$0xff]  ;;  %1037 = vperm.xlu0 %1659, %v1454_v30   ;;  %v1439_v32 = vld [vmem:[#allocation15] ss:$0 sm:$0xff]  ;;  %v720_v47 = vunpack.c.0.s8 %v719_v38  ;;  %s1180_s23 = scalar_lea.sflag [#allocation6], %s2447_s3  ;;  %s1937_s13 = scalar_lea.vmem %s1200_s5, 128 }
 0x119   : > { %1486 = vmatprep.subr.bf16.mxu0 %v2083_v1  ;;  %v664_v23 = vpack.c.bf16 %v663_v22, %v663_v22  ;;  %v928_v25 = vld [vmem:[#allocation16 + $0x8] sm:$0xff]  ;;  %v929_v26 = vld [vmem:[#allocation16 + $0x10] sm:$0xff]  ;;  %v930_v28 = vld [vmem:[#allocation16 + $0x18] sm:$0xff]  ;;  %p1938_p4 = scmp.ne.s32.totalorder %s1200_s5, %s1937_s13  ;;  %p2696_p9 = scmp.ne.s32.totalorder %s2681_s18, 0 }
 0x11a   : > { %1495 = vmatpush3.bf16.msra.mxu1 %v614_v11  ;;  %v931_v27 = vpack.c.bf16 %v928_v25, %v927_v24  ;;  %v932_v29 = vpack.c.bf16 %v930_v28, %v929_v26  ;;  %v1437_v34 = vld [vmem:[#allocation10] ss:$0 sm:$0xff]  ;;  %v723_v49 = vsub.s32 %v720_v47, %v2492_v48  ;;  %s2087_s28 = smov [#allocation18]  }
 0x11b   : > { %p1939_p0 = pnand %p1938_p4, %p2696_p9  ;;  %s1941_s26 = sshll.u32 %s2087_s28, 4  ;;  %s1942_s26 = int_to_ptr.vmem [resolvable:$false] %s1941_s26 }
 0x11c   : > { %1487 = vmatpush3.bf16.msra.mxu0 %v555_v14  ;;  %1508 = vmatprep.subr.bf16.mxu1 %v931_v27  ;;  %s1465_s6 = sshll.u32 %s2694_s30, 7  ;;  %s1943_s9 = scalar_lea.vmem %s1942_s26, 256 }
 0x11d   : > { %1497 = vmatmul.mubr.msk.bf16.vlgmr.msra.gmra.mrb[0].mxu1 %vm563_vm1, %v549_v15  ;;  %1500 = vmatprep.subr.bf16.mxu0 %v2083_v1  ;;  %s2565_s2 = scalar_lea.hbm %s2695_s27, %s1465_s6  ;;  %p1940_p7 = pneg %p1939_p0 }
 0x11e   : > { %1509 = vmatpush3.bf16.msra.mxu1 %v931_v27  ;;  %p1944_p11 = scmp.lt.s32.totalorder %s1200_s5, %s1942_s26  ;;  %p1945_p2 = scmp.lt.s32.totalorder %s1943_s9, %s1937_s13 }
 0x11f   : > { %1489 = vmatmul.mubr.msk.bf16.vlgmr.msra.gmra.mrb[0].mxu0 %vm563_vm1, %v549_v15  ;;  %1510 = vmatprep.subr.bf16.mxu1 %v932_v29 }
 0x120   : > { %1501 = vmatpush3.bf16.msra.mxu0 %v669_v18  ;;  %1504 = vmatprep.mubr.msk.bf16.mxu0 %vm2084_vm0, %v2083_v1  ;;  %p1946_p10 = por %p1945_p2, %p1944_p11 }
 0x121   : > { %1502 = vmatprep.subr.bf16.mxu0 %v2083_v1 }
 0x122   : > { %1511 = vmatpush3.bf16.msra.mxu1 %v932_v29  ;;  %p1947_p1 = pnand %p1946_p10, %p1940_p7 }
 0x124   : > { %1503 = vmatpush3.bf16.msra.mxu0 %v670_v21 }
 0x127   : > { %1505 = vmatmul.mubr.msk.bf16.vlgmr.msra.gmra.mrb[4].mxu0 %vm563_vm1, %v664_v23 }
 0x1f0   : > { %v656_v33 = vpop.f32.mrb[0].mxu1 }
 0x1f1   : > { %v657_v35 = vadd.f32 %v1439_v32, %v656_v33  ;;  %v1498_v36 = vpop.f32.mrb[1].mxu1 }
 0x1f2   : > { %v659_v40 = vpop.f32.mrb[2].mxu1  ;;  %v601_v41 = vpop.f32.mrb[0].mxu0 }
 0x1f3   : > { %662 = vst.msk [vmem:[#allocation2] sm:$0xff] %vm563_vm1, %v657_v35  ;;  %v1499_v42 = vpop.f32.mrb[3].mxu1  ;;  %v602_v43 = vadd.f32 %v1437_v34, %v601_v41  ;;  %v1490_v44 = vpop.f32.mrb[1].mxu0 }
 0x1f4   : > { %v604_v45 = vpop.f32.mrb[2].mxu0 }
 0x1f5   : > { %v1491_v46 = vpop.f32.mrb[3].mxu0  ;;  %608 = vst.msk [vmem:[%s531_s20] sm:$0xff] %vm607_vm2, %v602_v43 }
 0x1fa   : > { %v709_v50 = vpop.f32.mrb[4].mxu0  ;;  %v715_v51 = vld [vmem:[#allocation2] sm:$0xff] }
 0x1fb   : > { %v1506_v52 = vpop.f32.mrb[5].mxu0  ;;  %v716_v53 = vpack.c.bf16 %v715_v51, %v715_v51  ;;  %v750_v4 = vpack.c.bf16 %v709_v50, %v709_v50 }
 0x1fc   : > { %v712_v54 = vpop.f32.mrb[6].mxu0 }
 0x1fd   : > { %v1507_v55 = vpop.f32.mrb[7].mxu0  ;;  %v724_v56 = vrot.slane %v716_v53, %v723_v49 }
 0x1ff   : > { %v725_v57 = vcombine.high %v724_v56, %v724_v56  ;;  %v732_v58 = vrot.slane %v724_v56, %v723_v49 }
 0x201   : > { %v743_v60 = vunpack.i.h.s16 %v732_v58  ;;  %v1442_v61 = vpack.i.b16 %v732_v58, %v732_v58  ;;  %v739_v62 = vrot.slane %v725_v57, %v723_v49  ;;  %v740_v63 = vcombine.high %v732_v58, %v732_v58 }
 0x203   : > { %v752_v0 = vpack.i.b16 %v743_v60, %v743_v60  ;;  %v762_v1 = vrot.slane %v1442_v61, %v761_v59  ;;  %v745_v2 = vunpack.i.h.s16 %v739_v62  ;;  %v1443_v3 = vpack.i.b16 %v739_v62, %v739_v62 }
 0x204   : > { %v747_v5 = vunpack.i.h.s16 %v740_v63  ;;  %v1444_v6 = vpack.i.b16 %v740_v63, %v740_v63  ;;  %v741_v7 = vcombine.high %v739_v62, %v739_v62 }
 0x205   : > { %v766_v8 = vrot.slane %v752_v0, %v761_v59  ;;  %v792_v9 = vpack.i.b16 %v762_v1, %v762_v1  ;;  %v754_v10 = vpack.i.b16 %v745_v2, %v745_v2  ;;  %v770_v11 = vrot.slane %v1443_v3, %v761_v59 }
 0x206   : > { %v756_v12 = vpack.i.b16 %v747_v5, %v747_v5  ;;  %v778_v13 = vrot.slane %v1444_v6, %v761_v59  ;;  %v749_v14 = vunpack.i.h.s16 %v741_v7  ;;  %v1445_v15 = vpack.i.b16 %v741_v7, %v741_v7 }
 0x207   : > { %v797_v16 = vrot.slane %v792_v9, %v761_v59  ;;  %v799_v17 = vpack.i.b16 %v766_v8, %v766_v8  ;;  %v774_v18 = vrot.slane %v754_v10, %v761_v59  ;;  %v806_v19 = vpack.i.b16 %v770_v11, %v770_v11 }
 0x208   : > { %v782_v20 = vrot.slane %v756_v12, %v761_v59  ;;  %v820_v21 = vpack.i.b16 %v778_v13, %v778_v13  ;;  %v758_v22 = vpack.i.b16 %v749_v14, %v749_v14  ;;  %v786_v23 = vrot.slane %v1445_v15, %v761_v59 }
 0x209   : > { %v804_v24 = vrot.slane %v799_v17, %v761_v59  ;;  %v2499_v25 = vadd.bf16 %v797_v16, %v750_v4  ;;  %v811_v26 = vrot.slane %v806_v19, %v761_v59  ;;  %v813_v27 = vpack.i.b16 %v774_v18, %v774_v18 }
 0x20a   : > { %v825_v28 = vrot.slane %v820_v21, %v761_v59  ;;  %v827_v29 = vpack.i.b16 %v782_v20, %v782_v20  ;;  %v790_v30 = vrot.slane %v758_v22, %v761_v59  ;;  %v834_v31 = vpack.i.b16 %v786_v23, %v786_v23 }
 0x20b   : > { %v2501_v32 = vadd.bf16 %v804_v24, %v750_v4  ;;  %v855_v33 = vmul.bf16 %v2499_v25, %v2499_v25  ;;  %v818_v34 = vrot.slane %v813_v27, %v761_v59  ;;  %v2505_v35 = vadd.bf16 %v811_v26, %v750_v4 }
 0x20c   : > { %v832_v36 = vrot.slane %v827_v29, %v761_v59  ;;  %v2507_v37 = vadd.bf16 %v825_v28, %v750_v4  ;;  %v839_v38 = vrot.slane %v834_v31, %v761_v59  ;;  %v841_v40 = vpack.i.b16 %v790_v30, %v790_v30 }
 0x20d   : > { %v856_v41 = vmul.bf16 %v2501_v32, %v2501_v32  ;;  %v863_v42 = vmul.bf16 %v855_v33, %v2499_v25  ;;  %v2512_v43 = vadd.bf16 %v818_v34, %v750_v4  ;;  %v857_v44 = vmul.bf16 %v2505_v35, %v2505_v35 }
 0x20e   : > { %v2516_v45 = vadd.bf16 %v832_v36, %v750_v4  ;;  %v859_v46 = vmul.bf16 %v2507_v37, %v2507_v37  ;;  %v846_v47 = vrot.slane %v841_v40, %v761_v59  ;;  %v2520_v49 = vadd.bf16 %v839_v38, %v750_v4 }
 0x20f   : > { %v864_v50 = vmul.bf16 %v856_v41, %v2501_v32  ;;  %v871_v51 = vmul.bf16 1027030327, %v863_v42  ;;  %v858_v52 = vmul.bf16 %v2512_v43, %v2512_v43  ;;  %v865_v53 = vmul.bf16 %v857_v44, %v2505_v35 }
 0x210   : > { %v860_v54 = vmul.bf16 %v2516_v45, %v2516_v45  ;;  %v867_v55 = vmul.bf16 %v859_v46, %v2507_v37  ;;  %v2529_v56 = vadd.bf16 %v846_v47, %v750_v4  ;;  %v861_v57 = vmul.bf16 %v2520_v49, %v2520_v49 }
 0x211   : > { %v872_v58 = vmul.bf16 1027030327, %v864_v50  ;;  %v879_v59 = vadd.bf16 %v871_v51, %v2499_v25  ;;  %v866_v60 = vmul.bf16 %v858_v52, %v2512_v43  ;;  %v873_v61 = vmul.bf16 1027030327, %v865_v53 }
 0x212   : > { %v868_v62 = vmul.bf16 %v860_v54, %v2516_v45  ;;  %v875_v63 = vmul.bf16 1027030327, %v867_v55  ;;  %v862_v0 = vmul.bf16 %v2529_v56, %v2529_v56  ;;  %v869_v1 = vmul.bf16 %v861_v57, %v2520_v49 }
 0x213   : > { %v880_v2 = vadd.bf16 %v872_v58, %v2501_v32  ;;  %v887_v3 = vmul.bf16 1061961548, %v879_v59  ;;  %v874_v4 = vmul.bf16 1027030327, %v866_v60  ;;  %v881_v5 = vadd.bf16 %v873_v61, %v2505_v35 }
 0x214   : > { %v876_v6 = vmul.bf16 1027030327, %v868_v62  ;;  %v883_v7 = vadd.bf16 %v875_v63, %v2507_v37  ;;  %v870_v8 = vmul.bf16 %v862_v0, %v2529_v56  ;;  %v877_v9 = vmul.bf16 1027030327, %v869_v1  ;;  %v1038_v0 = vpop.permute.xlu0 %1037 }
 0x215   : > { %v888_v10 = vmul.bf16 1061961548, %v880_v2  ;;  %1661 = vtanh.bf16 %v887_v3  ;;  %v882_v11 = vadd.bf16 %v874_v4, %v2512_v43  ;;  %v889_v12 = vmul.bf16 1061961548, %v881_v5 }
 0x216   : > { %v884_v13 = vadd.bf16 %v876_v6, %v2516_v45  ;;  %v891_v14 = vmul.bf16 1061961548, %v883_v7  ;;  %v878_v15 = vmul.bf16 1027030327, %v870_v8  ;;  %v885_v16 = vadd.bf16 %v877_v9, %v2520_v49 }
 0x217   : > { %1663 = vtanh.bf16 %v888_v10  ;;  %v890_v17 = vmul.bf16 1061961548, %v882_v11 }
 0x218   : > { %1665 = vtanh.bf16 %v889_v12  ;;  %v892_v18 = vmul.bf16 1061961548, %v884_v13  ;;  %v886_v19 = vadd.bf16 %v878_v15, %v2529_v56  ;;  %v893_v20 = vmul.bf16 1061961548, %v885_v16 }
 0x219   : > { %1667 = vtanh.bf16 %v890_v17 }
 0x21a   : > { %1669 = vtanh.bf16 %v891_v14  ;;  %v894_v21 = vmul.bf16 1061961548, %v886_v19 }
 0x21b   : > { %1671 = vtanh.bf16 %v892_v18 }
 0x21c   : > { %1673 = vtanh.bf16 %v893_v20 }
 0x21d   : > { %1675 = vtanh.bf16 %v894_v21 }
 0x220   : > { %v1662_v22 = vpop.eup %1661 }
 0x221   : > { %v903_v23 = vadd.bf16 1065369472, %v1662_v22 }
 0x222   : > { %v1664_v24 = vpop.eup %1663 }
 0x223   : > { %v1666_v26 = vpop.eup %1665  ;;  %v904_v27 = vadd.bf16 1065369472, %v1664_v24  ;;  %v911_v28 = vmul.bf16 1056980736, %v903_v23 }
 0x224   : > { %v1668_v29 = vpop.eup %1667  ;;  %v905_v30 = vadd.bf16 1065369472, %v1666_v26 }
 0x225   : > { %v1670_v31 = vpop.eup %1669  ;;  %v912_v33 = vmul.bf16 1056980736, %v904_v27  ;;  %v906_v34 = vadd.bf16 1065369472, %v1668_v29  ;;  %v919_v42 = vmul.bf16 %v911_v28, %v2499_v25 }
 0x226   : > { %v1672_v36 = vpop.eup %1671  ;;  %v913_v38 = vmul.bf16 1056980736, %v905_v30  ;;  %v907_v40 = vadd.bf16 1065369472, %v1670_v31 }
 0x227   : > { %v1674_v41 = vpop.eup %1673  ;;  %v920_v44 = vmul.bf16 %v912_v33, %v2501_v32  ;;  %v914_v46 = vmul.bf16 1056980736, %v906_v34  ;;  %v908_v47 = vadd.bf16 1065369472, %v1672_v36 }
 0x228   : > { %v1676_v50 = vpop.eup %1675  ;;  %v921_v51 = vmul.bf16 %v913_v38, %v2505_v35  ;;  %v915_v52 = vmul.bf16 1056980736, %v907_v40  ;;  %v909_v53 = vadd.bf16 1065369472, %v1674_v41 }
 0x229   : > { %v1446_v54 = vcombine.low %v919_v42, %v920_v44  ;;  %v922_v55 = vmul.bf16 %v914_v46, %v2512_v43  ;;  %v916_v57 = vmul.bf16 1056980736, %v908_v47  ;;  %v910_v58 = vadd.bf16 1065369472, %v1676_v50 }
 0x22a   : > { %v923_v60 = vmul.bf16 %v915_v52, %v2507_v37  ;;  %v917_v62 = vmul.bf16 1056980736, %v909_v53 }
 0x22b   : > { %1512 = vmatprep.mubr.msk.bf16.mxu1 %vm563_vm1, %v1446_v54  ;;  %v1447_v59 = vcombine.low %v921_v51, %v922_v55  ;;  %v924_v25 = vmul.bf16 %v916_v57, %v2516_v45  ;;  %v918_v32 = vmul.bf16 1056980736, %v910_v58 }
 0x22c   : > { %v925_v43 = vmul.bf16 %v917_v62, %v2520_v49 }
 0x22d   : > { %1513 = vmatmul.mubr.msk.bf16.vlgmr.msra.gmra.mrb[4].mxu1 %vm563_vm1, %v1447_v59  ;;  %v1448_v61 = vcombine.low %v923_v60, %v924_v25  ;;  %v926_v35 = vmul.bf16 %v918_v32, %v2529_v56 }
 0x22f   : > { %1516 = vmatprep.mubr.msk.bf16.mxu1 %vm563_vm1, %v1448_v61  ;;  %v1449_v63 = vcombine.low %v925_v43, %v926_v35 }
 0x235   : > { %1517 = vmatmul.mubr.msk.bf16.gmra.mrb[8].mxu1 %vm563_vm1, %v1449_v63 }
 0x300   : > { %v1514_v1 = vpop.f32.mrb[4].mxu1 }
 0x301   : > { %v1042_v2 = vadd.f32 %v1514_v1, %v1038_v0  ;;  %v999_v37 = vpop.f32.mrb[5].mxu1 }
 0x302   : > { %v1040_v3 = vadd.f32 %v1038_v0, %v999_v37  ;;  %v1515_v45 = vpop.f32.mrb[6].mxu1 }
 0x303   : > { %v1457_v4 = vmul.f32 -1.442695, %v1042_v2  ;;  %v1043_v5 = vadd.f32 %v1515_v45, %v1038_v0  ;;  %v1002_v6 = vpop.f32.mrb[7].mxu1 }
 0x304   : > { %v1455_v7 = vmul.f32 -1.442695, %v1040_v3  ;;  %v1041_v8 = vadd.f32 %v1038_v0, %v1002_v6 }
 0x305   : > { %1677 = vpow2.f32 %v1457_v4  ;;  %v1458_v9 = vmul.f32 -1.442695, %v1043_v5 }
 0x306   : > { %1679 = vpow2.f32 %v1455_v7  ;;  %v1456_v56 = vmul.f32 -1.442695, %v1041_v8 }
 0x307   : > { %1681 = vpow2.f32 %v1458_v9 }
 0x308   : > { %1683 = vpow2.f32 %v1456_v56  ;;  %v1518_v49 = vpop.f32.mrb[8].mxu1 }
 0x309   : > { %v1046_v10 = vadd.f32 %v1518_v49, %v1038_v0  ;;  %v1015_v11 = vpop.f32.mrb[9].mxu1 }
 0x30a   : > { %v1044_v12 = vadd.f32 %v1038_v0, %v1015_v11  ;;  %v1519_v13 = vpop.f32.mrb[10].mxu1 }
 0x30b   : > { %v1461_v14 = vmul.f32 -1.442695, %v1046_v10  ;;  %v1047_v15 = vadd.f32 %v1519_v13, %v1038_v0  ;;  %v1018_v16 = vpop.f32.mrb[11].mxu1 }
 0x30c   : > { %v1459_v17 = vmul.f32 -1.442695, %v1044_v12  ;;  %v1045_v18 = vadd.f32 %v1038_v0, %v1018_v16 }
 0x30d   : > { %1685 = vpow2.f32 %v1461_v14  ;;  %v1462_v19 = vmul.f32 -1.442695, %v1047_v15 }
 0x30e   : > { %1687 = vpow2.f32 %v1459_v17  ;;  %v1460_v20 = vmul.f32 -1.442695, %v1045_v18 }
 0x30f   : > { %v1678_v21 = vpop.eup %1677  ;;  %1689 = vpow2.f32 %v1462_v19 }
 0x310   : > { %v1680_v22 = vpop.eup %1679  ;;  %v1074_v23 = vadd.f32 1.0, %v1678_v21  ;;  %1691 = vpow2.f32 %v1460_v20 }
 0x311   : > { %v1682_v24 = vpop.eup %1681  ;;  %v1072_v26 = vadd.f32 1.0, %v1680_v22 }
 0x312   : > { %v1684_v27 = vpop.eup %1683  ;;  %1693 = vrcp.f32 %v1074_v23  ;;  %v1075_v28 = vadd.f32 1.0, %v1682_v24 }
 0x313   : > { %1695 = vrcp.f32 %v1072_v26  ;;  %v1073_v29 = vadd.f32 1.0, %v1684_v27 }
 0x315   : > { %1697 = vrcp.f32 %v1073_v29 }
 0x316   : > { %1699 = vrcp.f32 %v1075_v28 }
 0x317   : > { %v1686_v30 = vpop.eup %1685 }
 0x318   : > { %v1688_v31 = vpop.eup %1687  ;;  %v1078_v38 = vadd.f32 1.0, %v1686_v30 }
 0x319   : > { %v1690_v33 = vpop.eup %1689  ;;  %v1076_v34 = vadd.f32 1.0, %v1688_v31 }
 0x31a   : > { %v1692_v36 = vpop.eup %1691  ;;  %v1079_v44 = vadd.f32 1.0, %v1690_v33 }
 0x31b   : > { %1701 = vrcp.f32 %v1076_v34  ;;  %v1077_v40 = vadd.f32 1.0, %v1692_v36 }
 0x31c   : > { %v1694_v41 = vpop.eup %1693 }
 0x31d   : > { %v1696_v42 = vpop.eup %1695  ;;  %1703 = vrcp.f32 %v1077_v40  ;;  %1111 = vperm.xlu1 %1660, %v1694_v41  }
 0x31e   : > { %1105 = vperm.xlu0 %1659, %v1696_v42   ;;  %1705 = vrcp.f32 %v1078_v38 }
 0x31f   : > { %v1698_v46 = vpop.eup %1697  ;;  %1707 = vrcp.f32 %v1079_v44 }
 0x320   : > { %v1700_v47 = vpop.eup %1699 }
 0x321   : > { %1108 = vperm.xlu1 %1660, %v1698_v46  }
 0x322   : > { %1114 = vperm.xlu0 %1659, %v1700_v47  }
 0x325   : > { %v1702_v50 = vpop.eup %1701 }
 0x326   : > { %1117 = vperm.xlu1 %1660, %v1702_v50  }
 0x327   : > { %v1704_v51 = vpop.eup %1703 }
 0x328   : > { %1120 = vperm.xlu0 %1659, %v1704_v51   ;;  %v1706_v52 = vpop.eup %1705 }
 0x329   : > { %v1708_v53 = vpop.eup %1707 }
 0x32a   : > { %1123 = vperm.xlu1 %1660, %v1706_v52  }
 0x32c   : > { %1126 = vperm.xlu0 %1659, %v1708_v53  }
 0x32d   : > { %1950 = shalt.err (!%p1947_p1)
}
 0x32e   : > { %s1951_s11 = scalar_lea.hbm %s2565_s2, 128  ;;  %s1955_s10 = scalar_lea.hbm %s2695_s27, 256 }
 0x32f   : > { %p1952_p5 = scmp.ne.s32.totalorder %s2565_s2, %s1951_s11  ;;  %p1956_p12 = scmp.lt.u32.totalorder %s2565_s2, %s2695_s27 }
 0x330   : > { %p1957_p6 = scmp.lt.u32.totalorder %s1955_s10, %s1951_s11  ;;  %p1959_p4 = scmp.lt.u32.totalorder %s1951_s11, %s2565_s2 }
 0x331   : > { %p1953_p8 = pnand %p1952_p5, %p2696_p9 }
 0x332   : > { %p1958_p13 = por %p1957_p6, %p1956_p12 }
 0x333   : > { %p1954_p3 = pneg %p1953_p8 }
 0x334   : > { %p1960_p0 = por %p1959_p4, %p1958_p13 }
 0x336   : > { %p1961_p7 = pnand %p1960_p0, %p1954_p3 }
 0x338   : > { %1964 = shalt.err (!%p1961_p7)
}
 0x339   : > { %1548 = dma.vmem_to_hbm [thread:$0]  (%p2696_p9), %s1200_s5, 128, %s2565_s2, %s1180_s23   ;;  %v1129_v54 = vand.u32 127, %v721_v39  ;;  %vm1162_vm3 = vcmask 1041409   ;;  %vm1164_vm4 = vcmask 1042434   ;;  %vm1166_vm5 = vcmask 1043459  }
 0x33a   : > { %vm1168_vm6 = vcmask 1044484   ;;  %vm1170_vm7 = vcmask 1045509   ;;  %vm1172_vm8 = vcmask 1046534   ;;  %s538_s25 = scalar_lea.vmem [#allocation19], %s2450_s4  ;;  %vm1174_vm9 = vcmask 1047559   ;;  %s2697_s13 = sld [smem:[#allocation36_spill]] }
 0x33b   : > { %v1132_v57 = vsub.s32 %v1129_v54, %v2492_v48  ;;  %s1214_s2 = sshll.u32 %s538_s25, 4  ;;  %vm1177_vm10 = vcmask 64512   ;;  %s1185_s4 = scalar_lea.sflag [#allocation20], %s2447_s3  ;;  %s2597_s2 = int_to_ptr.vmem [resolvable:$true] %s1214_s2 }
 0x33c   : > { %s1965_s26 = scalar_lea.vmem %s2597_s2, 128  ;;  %s2088_s9 = smov [#allocation19]  }
 0x33d   : > { %p1966_p11 = scmp.ne.s32.totalorder %s2597_s2, %s1965_s26  ;;  %s1969_s30 = sshll.u32 %s2088_s9, 4  ;;  %s1970_s30 = int_to_ptr.vmem [resolvable:$false] %s1969_s30 }
 0x33e   : > { %s1971_s11 = scalar_lea.vmem %s1970_s30, 256  ;;  %p1972_p1 = scmp.lt.s32.totalorder %s2597_s2, %s1970_s30 }
 0x33f   : > { %p1967_p2 = pnand %p1966_p11, %p2696_p9  ;;  %p1973_p5 = scmp.lt.s32.totalorder %s1971_s11, %s1965_s26 }
 0x340   : > { %s2595_s28 = scalar_lea.hbm %s2697_s13, %s1465_s6 }
 0x341   : > { %p1968_p10 = pneg %p1967_p2  ;;  %p1974_p8 = por %p1973_p5, %p1972_p1 }
 0x343   : > { %p1975_p3 = pnand %p1974_p8, %p1968_p10 }
 0x39c   : > { %v1112_v55 = vpop.permute.xlu1 %1111 }
 0x39d   : > { %v1106_v58 = vpop.permute.xlu0 %1105  ;;  %v1141_v61 = vrot.slane %v1112_v55, %v1132_v57 }
 0x39e   : > { %v1133_v60 = vrot.slane %v1106_v58, %v1132_v57 }
 0x3a0   : > { %v1109_v59 = vpop.permute.xlu1 %1108 }
 0x3a1   : > { %v1137_v25 = vrot.slane %v1109_v59, %v1132_v57  ;;  %v1115_v32 = vpop.permute.xlu0 %1114 }
 0x3a2   : > { %v1145_v35 = vrot.slane %v1115_v32, %v1132_v57 }
 0x3a3   : > { %v1163_v62 = vsel %vm1162_vm3, %v1137_v25, %v1133_v60 }
 0x3a4   : > { %v1165_v43 = vsel %vm1164_vm4, %v1141_v61, %v1163_v62 }
 0x3a5   : > { %v1118_v63 = vpop.permute.xlu1 %1117  ;;  %v1167_v39 = vsel %vm1166_vm5, %v1145_v35, %v1165_v43 }
 0x3a6   : > { %v1149_v0 = vrot.slane %v1118_v63, %v1132_v57 }
 0x3a7   : > { %v1121_v48 = vpop.permute.xlu0 %1120 }
 0x3a8   : > { %v1169_v1 = vsel %vm1168_vm6, %v1149_v0, %v1167_v39  ;;  %v1153_v2 = vrot.slane %v1121_v48, %v1132_v57 }
 0x3a9   : > { %v1124_v37 = vpop.permute.xlu1 %1123 }
 0x3aa   : > { %v1171_v3 = vsel %vm1170_vm7, %v1153_v2, %v1169_v1  ;;  %v1157_v45 = vrot.slane %v1124_v37, %v1132_v57 }
 0x3ab   : > { %v1127_v4 = vpop.permute.xlu0 %1126 }
 0x3ac   : > { %v1173_v5 = vsel %vm1172_vm8, %v1157_v45, %v1171_v3  ;;  %v1161_v6 = vrot.slane %v1127_v4, %v1132_v57 }
 0x3ae   : > { %v1175_v7 = vsel %vm1174_vm9, %v1161_v6, %v1173_v5 }
 0x3af   : > { %1178 = vst.msk [vmem:[%s538_s25] sm:$0xff] %vm1177_vm10, %v1175_v7 }
 0x3b0   : > { %1978 = shalt.err (!%p1975_p3)
}
 0x3b1   : > { %s1979_s3 = scalar_lea.hbm %s2595_s28, 128  ;;  %s1983_s24 = scalar_lea.hbm %s2697_s13, 256 }
 0x3b2   : > { %p1980_p12 = scmp.ne.s32.totalorder %s2595_s28, %s1979_s3  ;;  %p1984_p4 = scmp.lt.u32.totalorder %s2595_s28, %s2697_s13 }
 0x3b3   : > { %p1985_p0 = scmp.lt.u32.totalorder %s1983_s24, %s1979_s3  ;;  %p1987_p11 = scmp.lt.u32.totalorder %s1979_s3, %s2595_s28 }
 0x3b4   : > { %p1981_p6 = pnand %p1980_p12, %p2696_p9 }
 0x3b5   : > { %p1986_p7 = por %p1985_p0, %p1984_p4 }
 0x3b6   : > { %p1982_p13 = pneg %p1981_p6 }
 0x3b7   : > { %p1988_p2 = por %p1987_p11, %p1986_p7 }
 0x3b9   : > { %p1989_p10 = pnand %p1988_p2, %p1982_p13 }
 0x3bb   : > { %1992 = shalt.err (!%p1989_p10)
}
 0x3bc   : > { %1549 = dma.vmem_to_hbm [thread:$0]  (%p2696_p9), %s2597_s2, 128, %s2595_s28, %s1185_s4  }
 0x3bd PF: > { %s1226_s29 = sand.u32 1, %s2051_s15   ;;  %p2698_p1 = scmp.ne.s32.totalorder %s2682_s22, 0 }
 0x3be   : > { %p2699_p5 = scmp.ge.s32.totalorder %s2071_s19, 2  ;;  %s1227_s25 = scalar_lea.sflag [#allocation6], %s1226_s29 }
 0x3c0   : > { %p1579_p8 = pnand %p2699_p5, %p2698_p1 }
 0x3c2   : > { %2042 = dma.done.wait (!%p1579_p8), %s1227_s25, 128  }
 0x3c3   : > { %2044 = vsyncadd (!%p1579_p8), %s1227_s25, 4294967168  ;;  %s1236_s5 = scalar_lea.sflag [#allocation20], %s1226_s29 }
 0x3c4   : > { %2046 = dma.done.wait (!%p1579_p8), %s1236_s5, 128  }
 0x3c5   : > { %2048 = vsyncadd (!%p1579_p8), %s1236_s5, 4294967168  ;;  %s38_s19 = sadd.s32 1, %s2071_s19   ;;  %s2700_s15 = smov %s2055_s16 }
 0x3c6   : > { %p35_p3 = scmp.ge.s32.totalorder %s38_s19, 4   ;;  %s2701_s16 = smov %s2059_s17 }
 0x3c7   : > { %s2702_s17 = smov %s2368_s12  ;;  %s2703_s18 = smov %s2067_s8 }
 0x3c8   : > { %s2704_s8 = smov %s2706_s14  ;;  %37 = sbr.rel (!%p35_p3) target bundleno = 21 (0x15), region = 159 }
 0x3cf   :  { %1241 = vsyncpa [#allocation5], 1 }
 0x3d0   :  { %1243 = vsyncpa [#allocation5 + $0x1], 1 }
 0x3d1   :  { %1244 = vsyncpa [#allocation8], 1 }
 0x3d2   :  { %1246 = vsyncpa [#allocation8 + $0x1], 1 }
 0x3d3   :  { %1247 = vsyncpa [#allocation11], 1 }
 0x3d4   :  { %1248 = vsyncpa [#allocation14], 1 }
 0x3d5   :  { %1249 = vsyncpa [#allocation17], 1 }
 0x3d6   :  { %1250 = vsyncpa [#allocation6], 1 }
 0x3d7   :  { %1252 = vsyncpa [#allocation6 + $0x1], 1 }
 0x3d8   :  { %1253 = vsyncpa [#allocation20], 1 }
 0x3d9   :  { %1255 = vsyncpa [#allocation20 + $0x1], 1 }

</bundles_post_ra>
